<compile_context>
chip_gen: v6e
topology: v6e:2x2x1
jax: 0.10.0
libtpu: 0.0.40
codegen_flags: <defaults>
</compile_context>

<pallas_src>
import functools

import jax
import jax.numpy as jnp
from jax.experimental import pallas as pl
from jax.experimental.pallas import tpu as pltpu


def _round_up(x: int, m: int) -> int:
    return ((x + m - 1) // m) * m


def _matmul_kernel_f32(x_ref, w_ref, o_ref):
    # Output block is resident across the K grid axis (index_map ignores k),
    # so accumulate straight into it: no scratch buffer, no final copy.
    @pl.when(pl.program_id(2) == 0)
    def _():
        o_ref[...] = jnp.zeros_like(o_ref)

    o_ref[...] += jnp.dot(
        x_ref[...], w_ref[...], preferred_element_type=jnp.float32
    )


def _matmul_kernel_acc(x_ref, w_ref, o_ref, acc_ref):
    # Generic path (non-f32 output): f32 VMEM accumulator, cast at the end.
    @pl.when(pl.program_id(2) == 0)
    def _():
        acc_ref[...] = jnp.zeros_like(acc_ref)

    acc_ref[...] += jnp.dot(
        x_ref[...], w_ref[...], preferred_element_type=jnp.float32
    )

    @pl.when(pl.program_id(2) == pl.num_programs(2) - 1)
    def _():
        o_ref[...] = acc_ref[...].astype(o_ref.dtype)


def _pick_tiles(M: int, N: int, K: int):
    # Large, MXU-friendly tiles clamped to the (aligned) problem size.
    #   x tile  : tm*tk*4  <= 1 MiB
    #   w tile  : tk*tn*4  <= 2 MiB
    #   out/acc : tm*tn*4  <= 0.5 MiB
    # Double-buffered total ~7 MiB -> fits the 32 MiB scoped VMEM default on
    # v5e/v6e/v7x while keeping lane-dense (>=128, ideally >=256 wide) stores.
    tm = min(256, _round_up(M, 8))
    tn = min(512, _round_up(N, 128))
    tk = min(1024, _round_up(K, 128))
    return tm, tn, tk


@functools.partial(jax.jit, static_argnames=("tm", "tn", "tk"))
def non_bias_linear(x, weight, *, tm=None, tn=None, tk=None):
    """Computes x @ weight with a tiled Pallas TPU matmul kernel."""
    M, K = x.shape
    K2, N = weight.shape
    assert K == K2, "input feature dim must match weight rows"

    atm, atn, atk = _pick_tiles(M, N, K)
    tm = atm if tm is None else tm
    tn = atn if tn is None else tn
    tk = atk if tk is None else tk

    # Pad every dim up to a tile multiple. Zero padding along K is exact
    # (padded rows/cols contribute 0 to the reduction); M/N padding is sliced
    # off at the end.
    Mp, Np, Kp = _round_up(M, tm), _round_up(N, tn), _round_up(K, tk)
    if (Mp, Kp) != (M, K):
        x = jnp.pad(x, ((0, Mp - M), (0, Kp - K)))
    if (Kp, Np) != (K, N):
        weight = jnp.pad(weight, ((0, Kp - K), (0, Np - N)))

    grid = (Mp // tm, Np // tn, Kp // tk)

    out_dtype = x.dtype
    if out_dtype == jnp.float32:
        kernel = _matmul_kernel_f32
        scratch_shapes = []
    else:
        kernel = _matmul_kernel_acc
        scratch_shapes = [pltpu.VMEM((tm, tn), jnp.float32)]

    cost = pl.CostEstimate(
        flops=2 * Mp * Np * Kp,
        transcendentals=0,
        bytes_accessed=4 * (Mp * Kp + Kp * Np + Mp * Np),
    )

    out = pl.pallas_call(
        kernel,
        out_shape=jax.ShapeDtypeStruct((Mp, Np), out_dtype),
        grid_spec=pltpu.PrefetchScalarGridSpec(
            num_scalar_prefetch=0,
            grid=grid,
            in_specs=[
                pl.BlockSpec((tm, tk), lambda i, j, k: (i, k)),
                pl.BlockSpec((tk, tn), lambda i, j, k: (k, j)),
            ],
            out_specs=pl.BlockSpec((tm, tn), lambda i, j, k: (i, j)),
            scratch_shapes=scratch_shapes,
        ),
        compiler_params=pltpu.CompilerParams(
            dimension_semantics=("parallel", "parallel", "arbitrary"),
        ),
        cost_estimate=cost,
    )(x, weight)

    if (Mp, Np) != (M, N):
        out = out[:M, :N]
    return out


if __name__ == "__main__":
    # Small shapes consistent with NonBiasLinear(input_size, output_size).
    batch = 8
    input_size = 32   # not a multiple of 128 -> exercises the K zero-padding path
    output_size = 128

    key = jax.random.PRNGKey(0)
    kx, kw = jax.random.split(key)
    x = jax.random.normal(kx, (batch, input_size), dtype=jnp.float32)
    weight = jax.random.normal(kw, (input_size, output_size), dtype=jnp.float32)

    out = non_bias_linear(x, weight)
    jax.block_until_ready(out)

    # Correctness check against plain JAX reference (same semantics as torch.mm).
    ref = x @ weight
    assert out.shape == (batch, output_size)
    assert jnp.allclose(out, ref, atol=1e-4, rtol=1e-4), "mismatch vs reference"

    # Also exercise a larger, non-divisible shape to cover padding + multi-block grid.
    kx2, kw2 = jax.random.split(jax.random.PRNGKey(1))
    x2 = jax.random.normal(kx2, (300, 700), dtype=jnp.float32)
    w2 = jax.random.normal(kw2, (700, 900), dtype=jnp.float32)
    out2 = non_bias_linear(x2, w2)
    jax.block_until_ready(out2)
    ref2 = x2 @ w2
    assert jnp.allclose(out2, ref2, atol=1e-3, rtol=1e-3), "mismatch vs reference (large)"

    print("KERNEL_OK")
</pallas_src>

<mosaic_0001>
module attributes {stable_mosaic.version = 11 : i64} {
  func.func @_matmul_kernel_f32(%arg0: i32, %arg1: i32, %arg2: i32, %arg3: memref<8x128xf32, #tpu.memory_space<vmem>>, %arg4: memref<128x128xf32, #tpu.memory_space<vmem>>, %arg5: memref<8x128xf32, #tpu.memory_space<vmem>>) attributes {dimension_semantics = [#tpu.dimension_semantics<parallel>, #tpu.dimension_semantics<parallel>, #tpu.dimension_semantics<arbitrary>], iteration_bounds = array<i64: 1, 1, 1>, scalar_prefetch = 0 : i64, scratch_operands = 0 : i64, tpu.core_type = #tpu.core_type<tc>, window_params = [{transform_indices = @transform_0, window_bounds = array<i64: 8, 128>}, {transform_indices = @transform_1, window_bounds = array<i64: 128, 128>}, {transform_indices = @transform_2, window_bounds = array<i64: 8, 128>}]} {
    %c0_i32 = arith.constant 0 : i32
    %0 = arith.cmpi eq, %arg2, %c0_i32 : i32
    %1 = arith.extui %0 : i1 to i32
    %c0_i32_0 = arith.constant 0 : i32
    %2 = arith.cmpi ne, %1, %c0_i32_0 : i32
    scf.if %2 {
      %cst_8 = arith.constant 0.000000e+00 : f32
      %9 = vector.broadcast %cst_8 : f32 to vector<8x128xf32>
      %c0_9 = arith.constant 0 : index
      %c0_10 = arith.constant 0 : index
      %10 = vector.load %arg5[%c0_9, %c0_10] : memref<8x128xf32, #tpu.memory_space<vmem>>, vector<8x128xf32>
      tpu.vector_store %arg5[%c0_9, %c0_10], %9 {strides = array<i32>} : memref<8x128xf32, #tpu.memory_space<vmem>>, vector<8x128xf32>,
    } else {
    }
    %c0 = arith.constant 0 : index
    %c0_1 = arith.constant 0 : index
    %3 = vector.load %arg5[%c0, %c0_1] : memref<8x128xf32, #tpu.memory_space<vmem>>, vector<8x128xf32>
    %c0_2 = arith.constant 0 : index
    %c0_3 = arith.constant 0 : index
    %4 = vector.load %arg3[%c0_2, %c0_3] : memref<8x128xf32, #tpu.memory_space<vmem>>, vector<8x128xf32>
    %c0_4 = arith.constant 0 : index
    %c0_5 = arith.constant 0 : index
    %5 = vector.load %arg4[%c0_4, %c0_5] : memref<128x128xf32, #tpu.memory_space<vmem>>, vector<128x128xf32>
    %cst = arith.constant dense<0.000000e+00> : vector<8x128xf32>
    %6 = tpu.matmul %4, %5, %cst {dimension_numbers = #tpu.dot_dimension_numbers<[1], [0], [0], [1], [0, 0, 1, 1], [], []>} : vector<8x128xf32>, vector<128x128xf32>, vector<8x128xf32> -> vector<8x128xf32>
    %7 = arith.addf %3, %6 : vector<8x128xf32>
    %c0_6 = arith.constant 0 : index
    %c0_7 = arith.constant 0 : index
    %8 = vector.load %arg5[%c0_6, %c0_7] : memref<8x128xf32, #tpu.memory_space<vmem>>, vector<8x128xf32>
    tpu.vector_store %arg5[%c0_6, %c0_7], %7 {strides = array<i32>} : memref<8x128xf32, #tpu.memory_space<vmem>>, vector<8x128xf32>,
    return
  }
  func.func @transform_0(%arg0: i32, %arg1: i32, %arg2: i32) -> (i32, i32) {
    %c0_i32 = arith.constant 0 : i32
    return %arg0, %arg2 : i32, i32
  }
  func.func @transform_1(%arg0: i32, %arg1: i32, %arg2: i32) -> (i32, i32) {
    %c0_i32 = arith.constant 0 : i32
    return %arg2, %arg1 : i32, i32
  }
  func.func @transform_2(%arg0: i32, %arg1: i32, %arg2: i32) -> (i32, i32) {
    %c0_i32 = arith.constant 0 : i32
    return %arg0, %arg1 : i32, i32
  }
}

</mosaic_0001>

<bundles_post_ra>
// kernel: non_bias_linear.1
= control target key start
LH: loop header
LB: loop body
LE: loop exit
PB: predicated region body
PF: predicated region fallthrough
CT: control target
= control target key end

     0   :  { %v198_v1 = vmov 0.0   ;;  %vm199_vm0 = vmmov 0   ;;  %s270_s0 = inlined_call_operand.vmem [shape: f32[8,128], index: 0, kind: input, shape index: {}]   ;;  %s271_s1 = inlined_call_operand.vmem [shape: f32[128,128], index: 1, kind: input, shape index: {}]   ;;  %s272_s2 = inlined_call_operand.hbm [shape: f32[8,128], index: 2, kind: output, shape index: {}]  }
   0x1   :  { %v34_v0 = vld [vmem:[%s271_s1 + $0x78] sm:$0xff]  ;;  %138 = vmatprep.subr.mxu0 %v198_v1  ;;  %v33_v2 = vld [vmem:[%s271_s1 + $0x70] sm:$0xff]  ;;  %170 = vmatprep.mubr.msk.f32.mxu0 %vm199_vm0, %v198_v1  ;;  %v32_v3 = vld [vmem:[%s271_s1 + $0x68] sm:$0xff] }
   0x2   :  { %139 = vmatpush3.msra.mxu0 %v34_v0  ;;  %v31_v4 = vld [vmem:[%s271_s1 + $0x60] sm:$0xff] }
   0x3   :  { %140 = vmatprep.subr.mxu0 %v198_v1 }
   0x4   :  { %141 = vmatpush3.msra.mxu0 %v33_v2 }
   0x5   :  { %142 = vmatprep.subr.mxu0 %v198_v1 }
   0x6   :  { %7 = vsyncpa [#allocation3], 0  ;;  %143 = vmatpush3.msra.mxu0 %v32_v3  ;;  %v30_v5 = vld [vmem:[%s271_s1 + $0x58] sm:$0xff]  ;;  %v29_v6 = vld [vmem:[%s271_s1 + $0x50] sm:$0xff]  ;;  %s200_s15 = smov [#allocation2]  }
   0x7   :  { %144 = vmatprep.subr.mxu0 %v198_v1  ;;  %v28_v7 = vld [vmem:[%s271_s1 + $0x48] sm:$0xff]  ;;  %v27_v8 = vld [vmem:[%s271_s1 + $0x40] sm:$0xff]  ;;  %v26_v9 = vld [vmem:[%s271_s1 + $0x38] sm:$0xff]  ;;  %s113_s16 = sshll.u32 %s200_s15, 4  ;;  %s114_s16 = int_to_ptr.vmem [resolvable:$true] %s113_s16 }
   0x8   :  { %145 = vmatpush3.msra.mxu0 %v31_v4  ;;  %v25_v10 = vld [vmem:[%s271_s1 + $0x30] sm:$0xff]  ;;  %v24_v11 = vld [vmem:[%s271_s1 + $0x28] sm:$0xff]  ;;  %v23_v12 = vld [vmem:[%s271_s1 + $0x20] sm:$0xff]  ;;  %s176_s17 = scalar_lea.vmem %s114_s16, 128  ;;  %p181_p1 = scmp.lt.s32.totalorder %s114_s16, %s114_s16 }
   0x9   :  { %146 = vmatprep.subr.mxu0 %v198_v1  ;;  %v22_v13 = vld [vmem:[%s271_s1 + $0x18] sm:$0xff]  ;;  %v21_v14 = vld [vmem:[%s271_s1 + $0x10] sm:$0xff]  ;;  %v20_v15 = vld [vmem:[%s271_s1 + $0x8] sm:$0xff]  ;;  %p177_p0 = scmp.ne.s32.totalorder %s114_s16, %s176_s17  ;;  %p182_p2 = scmp.lt.s32.totalorder %s176_s17, %s176_s17 }
   0xa   :  { %147 = vmatpush3.msra.mxu0 %v30_v5  ;;  %v19_v16 = vld [vmem:[%s271_s1] sm:$0xff] }
   0xb   :  { %148 = vmatprep.subr.mxu0 %v198_v1  ;;  %v18_v17 = vld [vmem:[%s270_s0] sm:$0xff]  ;;  %p183_p3 = por %p182_p2, %p181_p1 }
   0xc   :  { %149 = vmatpush3.msra.mxu0 %v29_v6 }
   0xd   :  { %150 = vmatprep.subr.mxu0 %v198_v1  ;;  %p184_p4 = pnand %p183_p3, %p177_p0 }
   0xe   :  { %151 = vmatpush3.msra.mxu0 %v28_v7 }
   0xf   :  { %152 = vmatprep.subr.mxu0 %v198_v1 }
  0x10   :  { %153 = vmatpush3.msra.mxu0 %v27_v8 }
  0x11   :  { %154 = vmatprep.subr.mxu0 %v198_v1 }
  0x12   :  { %155 = vmatpush3.msra.mxu0 %v26_v9 }
  0x13   :  { %156 = vmatprep.subr.mxu0 %v198_v1 }
  0x14   :  { %157 = vmatpush3.msra.mxu0 %v25_v10 }
  0x15   :  { %158 = vmatprep.subr.mxu0 %v198_v1 }
  0x16   :  { %159 = vmatpush3.msra.mxu0 %v24_v11 }
  0x17   :  { %160 = vmatprep.subr.mxu0 %v198_v1 }
  0x18   :  { %161 = vmatpush3.msra.mxu0 %v23_v12 }
  0x19   :  { %162 = vmatprep.subr.mxu0 %v198_v1 }
  0x1a   :  { %163 = vmatpush3.msra.mxu0 %v22_v13 }
  0x1b   :  { %164 = vmatprep.subr.mxu0 %v198_v1 }
  0x1c   :  { %165 = vmatpush3.msra.mxu0 %v21_v14 }
  0x1d   :  { %166 = vmatprep.subr.mxu0 %v198_v1 }
  0x1e   :  { %167 = vmatpush3.msra.mxu0 %v20_v15 }
  0x1f   :  { %168 = vmatprep.subr.mxu0 %v198_v1 }
  0x20   :  { %169 = vmatpush3.msra.mxu0 %v19_v16 }
  0x21   :  { %171 = vmatmul.mubr.f32.vlgmr.msra.gmra.mxu0 %v18_v17 }
  0xe1   :  { %v101_v18 = vpop.f32.mrf.mxu0 }
  0xe2   :  { %106 = vst [vmem:[#allocation2] sm:$0xff] %v101_v18 }
  0xe3   :  { %v172_v19 = vpop.f32.mrf.mxu0 }
  0xe4   :  { %187 = shalt.err (!%p184_p4)
}
  0xe5   :  { %116 = dma.vmem_to_hbm [thread:$0]  %s114_s16, 128, %s272_s2, [#allocation3]  }
  0xe6   :  { %196 = dma.done.wait [#allocation3], 128  }
  0xe7   :  { %197 = vsyncadd [#allocation3], 4294967168 }
  0xe8   :  { %120 = vsyncpa [#allocation3], 1 }

</bundles_post_ra>
